<compile_context>
chip_gen: v5e
topology: v5e:2x2
jax: 0.10.0
libtpu: 0.0.40
codegen_flags: <defaults>
</compile_context>

<pallas_src>
import functools

import jax
import jax.numpy as jnp
from jax import lax
from jax.experimental import pallas as pl
from jax.experimental.pallas import tpu as pltpu


def _focal_kernel(labels_ref, logits_ref, fl_ref, correct_ref,
                  *, gamma: float, num_classes: int, n_rows: int, tile_m: int):
    step = pl.program_id(0)

    logits = logits_ref[...].astype(jnp.float32)          # (TM, C) cast in VMEM
    labels = labels_ref[...]                               # (TM, 1) int32

    class_ids = lax.broadcasted_iota(jnp.int32, logits.shape, 1)   # (TM, C)
    onehot = class_ids == labels                                   # (TM, C) bool

    # Numerically stable log-softmax gathered at the true class.
    row_max = jnp.max(logits, axis=1, keepdims=True)               # (TM, 1)
    shifted = logits - row_max                                     # (TM, C)
    denom = jnp.sum(jnp.exp(shifted), axis=1, keepdims=True)       # (TM, 1)
    logit_y = jnp.sum(jnp.where(onehot, shifted, 0.0), axis=1, keepdims=True)
    logpt = logit_y - jnp.log(denom)                               # (TM, 1)
    pt = jnp.exp(logpt)                                            # (TM, 1)

    # Focal weight (1 - pt)**gamma; gamma is a static Python float.
    if gamma == 0:
        weight = jnp.ones_like(pt)
    elif float(gamma).is_integer():
        weight = lax.integer_pow(1.0 - pt, int(gamma))
    else:
        weight = (1.0 - pt) ** gamma
    fl = -weight * logpt                                           # (TM, 1)

    # argmax over classes, first occurrence on ties (faithful to torch.argmax).
    # (A cheaper `logits[label] == row_max` check would drop one O(TM*C) reduce
    #  but changes exact-tie semantics, so we keep the faithful version.)
    pred = jnp.min(
        jnp.where(logits == row_max, class_ids, num_classes),
        axis=1, keepdims=True,
    )                                                              # (TM, 1) int32
    correct = (pred == labels).astype(jnp.float32)                 # (TM, 1)

    # Mask rows past the true batch (last, possibly partial, tile).
    row_ids = step * tile_m + lax.broadcasted_iota(jnp.int32, (tile_m, 1), 0)
    valid = row_ids < n_rows

    fl_ref[...] = jnp.where(valid, fl, 0.0)
    correct_ref[...] = jnp.where(valid, correct, 0.0)


def _default_tile_m(n_rows: int, n_classes: int) -> int:
    """Row tile sized so the f32 working tile is ~2 MiB, capped at 1024 rows."""
    target_bytes = 2 * 1024 * 1024
    tm = target_bytes // max(1, n_classes * 4)
    tm = max(8, min(1024, (tm // 8) * 8))
    rows_padded = ((n_rows + 7) // 8) * 8
    return max(8, min(tm, rows_padded))


def focal_loss(labels, logits, gamma: float = 0.0, tile_m: int | None = None):
    """Pallas equivalent of FocalLoss.forward.

    labels: int array of shape (N,) or (N, 1)
    logits: float array of shape (N, C), any float dtype (cast to f32 in-kernel)
    Returns (loss, [loss_value, accuracy]) matching the PyTorch module.
    """
    N, C = logits.shape
    labels2 = labels.reshape(N, 1).astype(jnp.int32)

    if tile_m is None:
        tile_m = _default_tile_m(N, C)
    tile_m = max(8, (int(tile_m) // 8) * 8)
    num_tiles = pl.cdiv(N, tile_m)

    itemsize = jnp.dtype(logits.dtype).itemsize
    in_tile_bytes = tile_m * C * itemsize
    f32_tile_bytes = tile_m * C * 4
    vmem_limit = int(
        2 * in_tile_bytes        # double-buffered logits input
        + 2 * tile_m * 4         # double-buffered labels
        + 4 * tile_m * 4         # double-buffered (fl, correct) outputs
        + 6 * f32_tile_bytes     # in-kernel f32 temporaries (rough upper bound)
        + (4 << 20)              # slack
    )
    # Stay well inside v7x's 64 MiB physical VMEM; never below sensible floor.
    vmem_limit = max(16 * 1024 * 1024, min(vmem_limit, 48 * 1024 * 1024))

    kernel = functools.partial(
        _focal_kernel, gamma=float(gamma), num_classes=C, n_rows=N, tile_m=tile_m)

    fl_rows, correct_rows = pl.pallas_call(
        kernel,
        out_shape=(
            jax.ShapeDtypeStruct((N, 1), jnp.float32),
            jax.ShapeDtypeStruct((N, 1), jnp.float32),
        ),
        grid_spec=pltpu.PrefetchScalarGridSpec(
            num_scalar_prefetch=0,
            grid=(num_tiles,),
            in_specs=[
                pl.BlockSpec((tile_m, 1), lambda i: (i, 0)),   # labels tile
                pl.BlockSpec((tile_m, C), lambda i: (i, 0)),   # logits tile (native dtype)
            ],
            out_specs=(
                pl.BlockSpec((tile_m, 1), lambda i: (i, 0)),   # per-row focal loss
                pl.BlockSpec((tile_m, 1), lambda i: (i, 0)),   # per-row correctness
            ),
        ),
        compiler_params=pltpu.CompilerParams(
            dimension_semantics=("parallel",),   # no carried state -> megacore-friendly
            vmem_limit_bytes=vmem_limit,
        ),
    )(labels2, logits)

    # Tiny final reductions in plain JAX (avoids a serial f32 scalar accumulator).
    loss = jnp.sum(fl_rows) / N
    accuracy = jnp.sum(correct_rows) / N
    # TODO(synk): the PyTorch module returns Python floats via .item(); we return
    # traced JAX scalars instead (no host sync inside the kernel path).
    return loss, [loss, accuracy]


def _focal_loss_ref(labels, logits, gamma=0.0):
    """Pure-JAX reference mirroring the PyTorch forward."""
    labels = labels.reshape(-1)
    probs = jax.nn.softmax(logits.astype(jnp.float32), axis=1)
    pt = jnp.take_along_axis(probs, labels[:, None], axis=1)
    logpt = jnp.log(pt)
    weight = jnp.ones_like(pt) if gamma == 0 else (1.0 - pt) ** gamma
    fl = -weight * logpt
    loss = fl.mean()
    npos = jnp.sum(jnp.argmax(logits.astype(jnp.float32), axis=1) == labels)
    return loss, npos / logits.shape[0]


if __name__ == "__main__":
    key = jax.random.PRNGKey(0)
    k_logits, k_labels, k_logits2, k_labels2 = jax.random.split(key, 4)

    # Case 1: small f32 problem, auto tile (single tile).
    N, C = 16, 16
    gamma = 2.0
    logits = jax.random.normal(k_logits, (N, C), dtype=jnp.float32)
    labels = jax.random.randint(k_labels, (N,), 0, C, dtype=jnp.int32)

    loss, (loss_val, acc) = focal_loss(labels, logits, gamma=gamma)
    jax.block_until_ready(loss)

    ref_loss, ref_acc = _focal_loss_ref(labels, logits, gamma=gamma)
    assert jnp.allclose(loss, ref_loss, rtol=1e-5, atol=1e-6), (loss, ref_loss)
    assert jnp.allclose(acc, ref_acc, rtol=1e-6, atol=1e-6), (acc, ref_acc)

    # Case 2: bf16 logits, N not divisible by the tile (exercises native-dtype
    # input path + cdiv grid + row masking).
    N2, C2 = 20, 24
    logits2 = jax.random.normal(k_logits2, (N2, C2), dtype=jnp.bfloat16)
    labels2 = jax.random.randint(k_labels2, (N2,), 0, C2, dtype=jnp.int32)

    loss2, (loss_val2, acc2) = focal_loss(labels2, logits2, gamma=0.0, tile_m=8)
    jax.block_until_ready(loss2)

    ref_loss2, ref_acc2 = _focal_loss_ref(labels2, logits2, gamma=0.0)
    assert jnp.allclose(loss2, ref_loss2, rtol=1e-5, atol=1e-5), (loss2, ref_loss2)
    assert jnp.allclose(acc2, ref_acc2, rtol=1e-6, atol=1e-6), (acc2, ref_acc2)

    print("KERNEL_OK")
</pallas_src>

<mosaic_0001>
module attributes {stable_mosaic.version = 11 : i64} {
  func.func @_focal_kernel(%arg0: i32, %arg1: memref<16x1xi32, #tpu.memory_space<vmem>>, %arg2: memref<16x16xf32, #tpu.memory_space<vmem>>, %arg3: memref<16x1xf32, #tpu.memory_space<vmem>>, %arg4: memref<16x1xf32, #tpu.memory_space<vmem>>) attributes {dimension_semantics = [#tpu.dimension_semantics<parallel>], iteration_bounds = array<i64: 1>, scalar_prefetch = 0 : i64, scratch_operands = 0 : i64, tpu.core_type = #tpu.core_type<tc>, window_params = [{transform_indices = @transform_0, window_bounds = array<i64: 16, 1>}, {transform_indices = @transform_1, window_bounds = array<i64: 16, 16>}, {transform_indices = @transform_2, window_bounds = array<i64: 16, 1>}, {transform_indices = @transform_3, window_bounds = array<i64: 16, 1>}]} {
    %c0 = arith.constant 0 : index
    %c0_0 = arith.constant 0 : index
    %0 = vector.load %arg2[%c0, %c0_0] : memref<16x16xf32, #tpu.memory_space<vmem>>, vector<16x16xf32>
    %c0_1 = arith.constant 0 : index
    %c0_2 = arith.constant 0 : index
    %1 = vector.load %arg1[%c0_1, %c0_2] : memref<16x1xi32, #tpu.memory_space<vmem>>, vector<16x1xi32>
    %2 = tpu.iota {dimensions = array<i32: 1>} : vector<16x16xi32>
    %3 = vector.broadcast %1 : vector<16x1xi32> to vector<16x16xi32>
    %4 = arith.cmpi eq, %2, %3 : vector<16x16xi32>
    %cst = arith.constant dense<0xFF800000> : vector<16xf32>
    %5 = vector.multi_reduction <maximumf>, %0, %cst [1] : vector<16x16xf32> to vector<16xf32>
    %6 = vector.shape_cast %5 : vector<16xf32> to vector<16x1xf32>
    %7 = vector.broadcast %6 : vector<16x1xf32> to vector<16x16xf32>
    %8 = arith.subf %0, %7 : vector<16x16xf32>
    %9 = math.exp %8 : vector<16x16xf32>
    %cst_3 = arith.constant dense<0.000000e+00> : vector<16xf32>
    %10 = vector.multi_reduction <add>, %9, %cst_3 [1] : vector<16x16xf32> to vector<16xf32>
    %11 = vector.shape_cast %10 : vector<16xf32> to vector<16x1xf32>
    %cst_4 = arith.constant 0.000000e+00 : f32
    %12 = vector.broadcast %cst_4 : f32 to vector<16x16xf32>
    %13 = arith.select %4, %8, %12 : vector<16x16xi1>, vector<16x16xf32>
    %cst_5 = arith.constant dense<0.000000e+00> : vector<16xf32>
    %14 = vector.multi_reduction <add>, %13, %cst_5 [1] : vector<16x16xf32> to vector<16xf32>
    %15 = vector.shape_cast %14 : vector<16xf32> to vector<16x1xf32>
    %16 = math.log %11 : vector<16x1xf32>
    %17 = arith.subf %15, %16 : vector<16x1xf32>
    %18 = math.exp %17 : vector<16x1xf32>
    %cst_6 = arith.constant 1.000000e+00 : f32
    %19 = vector.broadcast %cst_6 : f32 to vector<16x1xf32>
    %20 = arith.subf %19, %18 : vector<16x1xf32>
    %21 = arith.mulf %20, %20 : vector<16x1xf32>
    %cst_7 = arith.constant 0.000000e+00 : f32
    %22 = vector.broadcast %cst_7 : f32 to vector<16x1xf32>
    %23 = arith.subf %22, %21 : vector<16x1xf32>
    %24 = arith.mulf %23, %17 : vector<16x1xf32>
    %25 = vector.broadcast %6 : vector<16x1xf32> to vector<16x16xf32>
    %26 = arith.cmpf oeq, %0, %25 : vector<16x16xf32>
    %c16_i32 = arith.constant 16 : i32
    %27 = vector.broadcast %c16_i32 : i32 to vector<16x16xi32>
    %28 = arith.select %26, %2, %27 : vector<16x16xi1>, vector<16x16xi32>
    %cst_8 = arith.constant dense<2147483647> : vector<16xi32>
    %29 = vector.multi_reduction <minsi>, %28, %cst_8 [1] : vector<16x16xi32> to vector<16xi32>
    %30 = vector.shape_cast %29 : vector<16xi32> to vector<16x1xi32>
    %31 = arith.cmpi eq, %30, %1 : vector<16x1xi32>
    %32 = arith.extui %31 : vector<16x1xi1> to vector<16x1xi32>
    %33 = arith.sitofp %32 : vector<16x1xi32> to vector<16x1xf32>
    %c16_i32_9 = arith.constant 16 : i32
    %34 = arith.muli %arg0, %c16_i32_9 : i32
    %35 = tpu.iota {dimensions = array<i32: 0>} : vector<16x1xi32>
    %36 = vector.broadcast %34 : i32 to vector<16x1xi32>
    %37 = arith.addi %36, %35 : vector<16x1xi32>
    %c16_i32_10 = arith.constant 16 : i32
    %38 = vector.broadcast %c16_i32_10 : i32 to vector<16x1xi32>
    %39 = arith.cmpi slt, %37, %38 : vector<16x1xi32>
    %cst_11 = arith.constant 0.000000e+00 : f32
    %40 = vector.broadcast %cst_11 : f32 to vector<16x1xf32>
    %41 = arith.select %39, %24, %40 : vector<16x1xi1>, vector<16x1xf32>
    %c0_12 = arith.constant 0 : index
    %c0_13 = arith.constant 0 : index
    %42 = vector.load %arg3[%c0_12, %c0_13] : memref<16x1xf32, #tpu.memory_space<vmem>>, vector<16x1xf32>
    tpu.vector_store %arg3[%c0_12, %c0_13], %41 {strides = array<i32>} : memref<16x1xf32, #tpu.memory_space<vmem>>, vector<16x1xf32>,
    %cst_14 = arith.constant 0.000000e+00 : f32
    %43 = vector.broadcast %cst_14 : f32 to vector<16x1xf32>
    %44 = arith.select %39, %33, %43 : vector<16x1xi1>, vector<16x1xf32>
    %c0_15 = arith.constant 0 : index
    %c0_16 = arith.constant 0 : index
    %45 = vector.load %arg4[%c0_15, %c0_16] : memref<16x1xf32, #tpu.memory_space<vmem>>, vector<16x1xf32>
    tpu.vector_store %arg4[%c0_15, %c0_16], %44 {strides = array<i32>} : memref<16x1xf32, #tpu.memory_space<vmem>>, vector<16x1xf32>,
    return
  }
  func.func @transform_0(%arg0: i32) -> (i32, i32) {
    %c0_i32 = arith.constant 0 : i32
    %c0_i32_0 = arith.constant 0 : i32
    return %arg0, %c0_i32 : i32, i32
  }
  func.func @transform_1(%arg0: i32) -> (i32, i32) {
    %c0_i32 = arith.constant 0 : i32
    %c0_i32_0 = arith.constant 0 : i32
    return %arg0, %c0_i32 : i32, i32
  }
  func.func @transform_2(%arg0: i32) -> (i32, i32) {
    %c0_i32 = arith.constant 0 : i32
    %c0_i32_0 = arith.constant 0 : i32
    return %arg0, %c0_i32 : i32, i32
  }
  func.func @transform_3(%arg0: i32) -> (i32, i32) {
    %c0_i32 = arith.constant 0 : i32
    %c0_i32_0 = arith.constant 0 : i32
    return %arg0, %c0_i32 : i32, i32
  }
}

</mosaic_0001>

<bundles_post_ra>
// kernel: tpu_custom_call.1
= control target key start
LH: loop header
LB: loop body
LE: loop exit
PB: predicated region body
PF: predicated region fallthrough
CT: control target
= control target key end

     0   :  { %vm27_vm0 = vcmask 130048   ;;  %v156_v1 = vmov 0   ;;  %v17_v7 = vlaneseq  ;;  %vm123_vm7 = vcmask 7168   ;;  %s222_s1 = inlined_call_operand.vmem [shape: f32[16,16], index: 1, kind: input, shape index: {}]   ;;  %s223_s0 = inlined_call_operand.vmem [shape: s32[16,1], index: 0, kind: input, shape index: {}]   ;;  %s224_s2 = inlined_call_operand.vmem [shape: f32[16,1], index: 2, kind: output, shape index: {0}]   ;;  %s225_s3 = inlined_call_operand.vmem [shape: f32[16,1], index: 3, kind: output, shape index: {1}]  }
   0x1   :  { %v13_v0 = vld [vmem:[%s222_s1] sm:$0xff]  ;;  %142 = vset.pattern.permute.xlu1 %v156_v1  ;;  %143 = vset.pattern.permute.xlu0 %v156_v1  ;;  %v14_v4 = vld [vmem:[%s222_s1 + $0x8] sm:$0xff] }
   0x2   :  { %v184_v2 = vld [vmem:[%s223_s0] sm:$0xff]  ;;  %v28_v3 = vsel %vm27_vm0, %v13_v0, -inf  ;;  %v194_v5 = vld [vmem:[%s223_s0 + $0x8] sm:$0xff]  ;;  %v31_v6 = vsel %vm27_vm0, %v14_v4, -inf  ;;  %v18_v8 = vand.u32 127, %v17_v7  ;;  %v157_v7 = vmov 0.0  }
   0x3   :  { %20 = vperm.xlu1 %142, %v184_v2   ;;  %29 = vmax.xlane.f32.xlu0 %v28_v3 }
   0xb   :  { %23 = vperm.xlu1 %142, %v194_v5   ;;  %32 = vmax.xlane.f32.xlu0 %v31_v6 }
  0x75   :  { %v21_v11 = vpop.permute.xlu1 %20 }
  0x76   :  { %v30_v9 = vpop.xlane.xlu0 %29  ;;  %vm25_vm4 = vcmp.eq.s32.totalorder %v18_v8, %v21_v11 }
  0x77   :  { %v34_v10 = vsub.f32 %v13_v0, %v30_v9  ;;  %vm72_vm1 = vcmp.eq.f32.partialorder %v13_v0, %v30_v9 }
  0x78   :  { %v74_v12 = vsel %vm72_vm1, %v18_v8, 16 }
  0x79   :  { %v36_v13 = vmul.f32 1.442695, %v34_v10  ;;  %v76_v14 = vsel %vm27_vm0, %v74_v12, 2147483647  ;;  %v46_v31 = vsel %vm25_vm4, %v34_v10, 0.0 }
  0x7a   :  { %v78_v15 = vshra.s32 %v76_v14, 16  ;;  %v48_v32 = vsel %vm27_vm0, %v46_v31, 0.0  ;;  %v77_v33 = vand.u32 65535, %v76_v14 }
  0x7b   :  { %144 = vpow2.f32 %v36_v13 }
  0x7c   :  { %v80_v16 = vcvt.s32.f32 %v78_v15  ;;  %v79_v35 = vcvt.s32.f32 %v77_v33 }
  0x7d   :  { %v24_v22 = vpop.permute.xlu1 %23 }
  0x7e   :  { %81 = vmin.xlane.f32.xlu2 %v80_v16  ;;  %v33_v17 = vpop.xlane.xlu0 %32  ;;  %vm26_vm3 = vcmp.eq.s32.totalorder %v18_v8, %v24_v22 }
  0x7f   :  { %v35_v18 = vsub.f32 %v14_v4, %v33_v17  ;;  %vm73_vm2 = vcmp.eq.f32.partialorder %v14_v4, %v33_v17 }
  0x80   :  { %v75_v19 = vsel %vm73_vm2, %v18_v8, 16 }
  0x81   :  { %v145_v20 = vpop.eup %144  ;;  %v38_v21 = vmul.f32 1.442695, %v35_v18  ;;  %v91_v23 = vsel %vm27_vm0, %v75_v19, 2147483647  ;;  %v47_v27 = vsel %vm26_vm3, %v35_v18, 0.0 }
  0x82   :  { %v40_v24 = vsel %vm27_vm0, %v145_v20, 0.0  ;;  %v93_v25 = vshra.s32 %v91_v23, 16  ;;  %v51_v30 = vsel %vm27_vm0, %v47_v27, 0.0  ;;  %v92_v37 = vand.u32 65535, %v91_v23 }
  0x83   :  { %146 = vpow2.f32 %v38_v21  ;;  %41 = vadd.xlane.f32.xlu0 %v40_v24 }
  0x84   :  { %v95_v26 = vcvt.s32.f32 %v93_v25  ;;  %v94_v40 = vcvt.s32.f32 %v92_v37 }
  0x86   :  { %96 = vmin.xlane.f32.xlu2 %v95_v26 }
  0x89   :  { %v147_v28 = vpop.eup %146 }
  0x8a   :  { %v43_v29 = vsel %vm27_vm0, %v147_v28, 0.0 }
  0x8b   :  { %44 = vadd.xlane.f32.xlu1 %v43_v29  ;;  %52 = vadd.xlane.f32.xlu0 %v51_v30 }
  0x8e   :  { %49 = vadd.xlane.f32.xlu2 %v48_v32 }
  0xf1   :  { %v82_v34 = vpop.xlane.xlu2 %81 }
  0xf2   :  { %vm83_vm5 = vcmp.eq.f32.partialorder %v80_v16, %v82_v34  ;;  %v88_v63 = vcvt.f32.s32 %v82_v34 }
  0xf3   :  { %v84_v36 = vsel %vm83_vm5, %v79_v35, inf }
  0xf4   :  { %85 = vmin.xlane.f32.xlu2 %v84_v36  ;;  %v89_v1 = vshll.u32 %v88_v63, 16 }
  0xf6   :  { %v42_v38 = vpop.xlane.xlu0 %41 }
  0xf7   :  { %148 = vlog2.f32 %v42_v38 }
  0xf9   :  { %v97_v39 = vpop.xlane.xlu2 %96 }
  0xfa   :  { %vm98_vm6 = vcmp.eq.f32.partialorder %v95_v26, %v97_v39  ;;  %v103_v6 = vcvt.f32.s32 %v97_v39 }
  0xfb   :  { %v99_v41 = vsel %vm98_vm6, %v94_v40, inf }
  0xfc   :  { %100 = vmin.xlane.f32.xlu0 %v99_v41  ;;  %v104_v10 = vshll.u32 %v103_v6, 16 }
  0xfd   :  { %v149_v42 = vpop.eup %148 }
  0xfe   :  { %v45_v43 = vpop.xlane.xlu1 %44  ;;  %v55_v44 = vmul.f32 0.6931472, %v149_v42  ;;  %v53_v50 = vpop.xlane.xlu0 %52 }
  0xff   :  { %150 = vlog2.f32 %v45_v43 }
 0x101   :  { %v50_v45 = vpop.xlane.xlu2 %49 }
 0x102   :  { %v58_v46 = vsub.f32 %v50_v45, %v55_v44 }
 0x104   :  { %v60_v47 = vmul.f32 1.442695, %v58_v46 }
 0x105   :  { %v151_v48 = vpop.eup %150 }
 0x106   :  { %v57_v49 = vmul.f32 0.6931472, %v151_v48  ;;  %152 = vpow2.f32 %v60_v47 }
 0x108   :  { %v59_v51 = vsub.f32 %v53_v50, %v57_v49 }
 0x10a   :  { %v62_v52 = vmul.f32 1.442695, %v59_v51 }
 0x10c   :  { %v153_v53 = vpop.eup %152  ;;  %154 = vpow2.f32 %v62_v52 }
 0x10d   :  { %v64_v54 = vsub.f32 1.0, %v153_v53 }
 0x10f   :  { %v66_v55 = vmul.f32 %v64_v54, %v64_v54 }
 0x111   :  { %v68_v56 = vsub.f32 0.0, %v66_v55 }
 0x112   :  { %v155_v57 = vpop.eup %154 }
 0x113   :  { %v65_v58 = vsub.f32 1.0, %v155_v57  ;;  %v70_v59 = vmul.f32 %v68_v56, %v58_v46 }
 0x115   :  { %v67_v60 = vmul.f32 %v65_v58, %v65_v58  ;;  %124 = vst.msk [vmem:[%s224_s2] sm:$0xff] %vm123_vm7, %v70_v59 }
 0x117   :  { %v69_v61 = vsub.f32 0.0, %v67_v60 }
 0x119   :  { %v71_v62 = vmul.f32 %v69_v61, %v59_v51 }
 0x11b   :  { %125 = vst.msk [vmem:[%s224_s2 + $0x8] sm:$0xff] %vm123_vm7, %v71_v62 }
 0x167   :  { %v86_v0 = vpop.xlane.xlu2 %85 }
 0x168   :  { %v87_v3 = vcvt.f32.s32 %v86_v0 }
 0x16a   :  { %v90_v4 = vadd.s32 %v89_v1, %v87_v3 }
 0x16c   :  { %vm106_vm8 = vcmp.eq.s32.totalorder %v90_v4, %v184_v2 }
 0x16d   :  { %v138_v8 = vsel %vm106_vm8, 1.0, %v157_v7 }
 0x16e   :  { %128 = vst.msk [vmem:[%s225_s3] sm:$0xff] %vm123_vm7, %v138_v8 }
 0x16f   :  { %v101_v9 = vpop.xlane.xlu0 %100 }
 0x170   :  { %v102_v11 = vcvt.f32.s32 %v101_v9 }
 0x172   :  { %v105_v12 = vadd.s32 %v104_v10, %v102_v11 }
 0x174   :  { %vm107_vm9 = vcmp.eq.s32.totalorder %v105_v12, %v194_v5 }
 0x175   :  { %v139_v13 = vsel %vm107_vm9, 1.0, %v157_v7 }
 0x176   :  { %129 = vst.msk [vmem:[%s225_s3 + $0x8] sm:$0xff] %vm123_vm7, %v139_v13 }

</bundles_post_ra>
